<compile_context>
chip_gen: v7x
topology: tpu7x:2x2x1
jax: 0.10.0
libtpu: 0.0.40
codegen_flags: <defaults>
</compile_context>

<pallas_src>
import functools
import math

import jax
import jax.numpy as jnp
from jax.experimental import pallas as pl
from jax.experimental.pallas import tpu as pltpu

_NEG_INF = -1e9
_LN_EPS = 1e-5


# ----------------------------------------------------------------------------
# Per-generation tuning knobs
# ----------------------------------------------------------------------------
@functools.lru_cache()
def _device_kind():
    try:
        return jax.devices()[0].device_kind.lower()
    except Exception:
        return ""


@functools.lru_cache()
def _vmem_limit_bytes():
    kind = _device_kind()
    if "v7" in kind:
        return 48 * 1024 * 1024          # v7x: 64 MiB physical, leave headroom
    if "v4" in kind or "v5" in kind or "v6" in kind:
        return 100 * 1024 * 1024         # 128 MiB physical
    if "v2" in kind or "v3" in kind:
        return 14 * 1024 * 1024
    return 32 * 1024 * 1024


@functools.lru_cache()
def _row_tile_target():
    return 512 if _vmem_limit_bytes() >= 100 * 1024 * 1024 else 256


@functools.lru_cache()
def _attn_q_tile_target():
    kind = _device_kind()
    # v5e MXU is 4x128^2 -> 128 is the native M shape; v6e/v7x prefer 256.
    if "v6" in kind or "v7" in kind:
        return 256
    return 128


def _pick_tile(n, target, mult=8):
    """Largest divisor of n that is <= target and a multiple of mult (or n)."""
    for t in range(min(n, target), 0, -1):
        if n % t == 0 and (t % mult == 0 or t == n):
            return t
    return n


def _invariant_spec(block_shape, index_map):
    """Grid-invariant block: single-buffer it when the API supports it."""
    if hasattr(pl, "Buffered"):
        try:
            return pl.BlockSpec(block_shape, index_map,
                                pipeline_mode=pl.Buffered(1))
        except TypeError:
            pass
    return pl.BlockSpec(block_shape, index_map)


def _layernorm_f32(z, g, b, eps):
    mu = jnp.mean(z, axis=-1, keepdims=True)
    var = jnp.mean(jnp.square(z - mu), axis=-1, keepdims=True)
    return (z - mu) * jax.lax.rsqrt(var + eps) * g + b


# ----------------------------------------------------------------------------
# QKV projection (+ optional condition add) -> lane-dense (B*S, E) bf16 slabs
# ----------------------------------------------------------------------------
def _make_qkv_kernel(has_cond):
    def kernel(*args):
        if has_cond:
            x_ref, c_ref, w_ref, b_ref, q_ref, k_ref, v_ref, xs_ref = args
            xf = x_ref[...].astype(jnp.float32) + c_ref[...].astype(jnp.float32)
            xs_ref[...] = xf.astype(xs_ref.dtype)
            xin = xf.astype(jnp.bfloat16)
        else:
            x_ref, w_ref, b_ref, q_ref, k_ref, v_ref = args
            xin = x_ref[...]                          # already bf16
        e = q_ref.shape[-1]
        y = jnp.dot(xin, w_ref[...],
                    preferred_element_type=jnp.float32) + b_ref[...]
        # three whole-tile lane-dense stores (no per-head slicing)
        q_ref[...] = y[:, :e].astype(q_ref.dtype)
        k_ref[...] = y[:, e:2 * e].astype(k_ref.dtype)
        v_ref[...] = y[:, 2 * e:].astype(v_ref.dtype)
    return kernel


def qkv_projection(x, cond, w_t, bias, batch, seq, scale):
    """x: (B*S, E) bf16.  Returns q, k, v, residual as (B*S, E) bf16 slabs."""
    n, e = x.shape
    ts = _pick_tile(seq, _row_tile_target())
    sblocks = seq // ts

    # fold the 1/sqrt(dh) attention scale into the Q slice of the projection
    scale_vec = jnp.concatenate([jnp.full((e,), scale, w_t.dtype),
                                 jnp.ones((2 * e,), w_t.dtype)])
    w_s = (w_t * scale_vec[None, :]).astype(jnp.bfloat16)
    b_s = (bias * scale_vec).reshape(1, -1)           # stays f32

    row_spec = pl.BlockSpec((ts, e), lambda bb, si: (bb * sblocks + si, 0))
    w_spec = _invariant_spec((e, 3 * e), lambda bb, si: (0, 0))
    b_spec = _invariant_spec((1, 3 * e), lambda bb, si: (0, 0))
    slab = jax.ShapeDtypeStruct((n, e), jnp.bfloat16)
    cp = pltpu.CompilerParams(dimension_semantics=("parallel", "parallel"),
                              vmem_limit_bytes=_vmem_limit_bytes())

    if cond is None:
        q, k, v = pl.pallas_call(
            _make_qkv_kernel(False),
            grid=(batch, sblocks),
            out_shape=(slab, slab, slab),
            in_specs=[row_spec, w_spec, b_spec],
            out_specs=(row_spec, row_spec, row_spec),
            compiler_params=cp,
        )(x, w_s, b_s)
        return q, k, v, x

    q, k, v, xs = pl.pallas_call(
        _make_qkv_kernel(True),
        grid=(batch, sblocks),
        out_shape=(slab, slab, slab, slab),
        in_specs=[row_spec, row_spec, w_spec, b_spec],
        out_specs=(row_spec, row_spec, row_spec, row_spec),
        compiler_params=cp,
    )(x, cond, w_s, b_s)
    return q, k, v, xs


# ----------------------------------------------------------------------------
# Flash-style multi-head attention: grid (B, q-tile, kv-tile)
# ----------------------------------------------------------------------------
def _make_attn_kernel(nhead, has_mask):
    def kernel(*args):
        if has_mask:
            q_ref, k_ref, v_ref, m_ref, o_ref, m_sc, l_sc, acc_sc = args
        else:
            q_ref, k_ref, v_ref, o_ref, m_sc, l_sc, acc_sc = args
        tq, e = q_ref.shape
        tk = k_ref.shape[0]
        dh = e // nhead
        ki = pl.program_id(2)

        @pl.when(ki == 0)
        def _():
            m_sc[...] = jnp.full_like(m_sc, -1e30)
            l_sc[...] = jnp.zeros_like(l_sc)
            acc_sc[...] = jnp.zeros_like(acc_sc)

        qh = q_ref[...].reshape(tq, nhead, dh)         # bf16
        kh = k_ref[...].reshape(tk, nhead, dh)
        vh = v_ref[...].reshape(tk, nhead, dh)
        # scale is pre-folded into the Q projection weights
        s = jnp.einsum("qhd,khd->hqk", qh, kh,
                       preferred_element_type=jnp.float32)
        if has_mask:
            s = s + m_ref[...]                         # (1,{1|tq},tk) broadcast

        m_prev = m_sc[...]
        m_new = jnp.maximum(m_prev, jnp.max(s, axis=-1, keepdims=True))
        alpha = jnp.exp(m_prev - m_new)
        p = jnp.exp(s - m_new)
        l_sc[...] = alpha * l_sc[...] + jnp.sum(p, axis=-1, keepdims=True)
        acc_sc[...] = alpha * acc_sc[...] + jnp.einsum(
            "hqk,khd->hqd", p.astype(vh.dtype), vh,
            preferred_element_type=jnp.float32)
        m_sc[...] = m_new

        @pl.when(ki == pl.num_programs(2) - 1)
        def _():
            inv = pl.reciprocal(l_sc[...], approx=True)      # (H, tq, 1)
            out = (acc_sc[...] * inv).transpose(1, 0, 2).reshape(tq, e)
            o_ref[...] = out.astype(o_ref.dtype)             # one lane-dense store
    return kernel


def attention(q, k, v, add_mask, nhead, batch, seq):
    """q,k,v: (B*S, E) bf16 slabs; add_mask: None or (Bm, {1|S}, S) f32."""
    n, e = q.shape
    dh = e // nhead
    tq = _pick_tile(seq, _attn_q_tile_target())
    tk = _pick_tile(seq, 256, mult=128)
    nq, nk = seq // tq, seq // tk

    q_spec = pl.BlockSpec((tq, e), lambda bb, qi, ki: (bb * nq + qi, 0))
    kv_spec = pl.BlockSpec((tk, e), lambda bb, qi, ki: (bb * nk + ki, 0))
    out_spec = pl.BlockSpec((tq, e), lambda bb, qi, ki: (bb * nq + qi, 0))

    in_specs = [q_spec, kv_spec, kv_spec]
    args = [q, k, v]
    has_mask = add_mask is not None
    if has_mask:
        mb, mr, _ = add_mask.shape
        mrows = tq if mr > 1 else 1
        in_specs.append(pl.BlockSpec(
            (1, mrows, tk),
            lambda bb, qi, ki: (bb if mb > 1 else 0, qi if mr > 1 else 0, ki)))
        args.append(add_mask)

    return pl.pallas_call(
        _make_attn_kernel(nhead, has_mask),
        grid=(batch, nq, nk),
        out_shape=jax.ShapeDtypeStruct((n, e), jnp.bfloat16),
        in_specs=in_specs,
        out_specs=out_spec,
        scratch_shapes=[
            pltpu.VMEM((nhead, tq, 1), jnp.float32),
            pltpu.VMEM((nhead, tq, 1), jnp.float32),
            pltpu.VMEM((nhead, tq, dh), jnp.float32),
        ],
        compiler_params=pltpu.CompilerParams(
            dimension_semantics=("parallel", "parallel", "arbitrary"),
            vmem_limit_bytes=_vmem_limit_bytes()),
    )(*args)


# ----------------------------------------------------------------------------
# Fused out-projection + residual + LayerNorm
# ----------------------------------------------------------------------------
def _proj_add_ln_kernel(a_ref, x_ref, w_ref, b_ref, g_ref, bt_ref, o_ref,
                        *, eps):
    y = jnp.dot(a_ref[...], w_ref[...],
                preferred_element_type=jnp.float32) + b_ref[...]
    z = x_ref[...].astype(jnp.float32) + y
    o_ref[...] = _layernorm_f32(z, g_ref[...], bt_ref[...], eps).astype(o_ref.dtype)


def proj_add_layernorm(a, x, w_t, bias, gamma, beta, eps=_LN_EPS):
    n, e = a.shape
    tm = _pick_tile(n, _row_tile_target())
    row = pl.BlockSpec((tm, e), lambda i: (i, 0))
    vec = _invariant_spec((1, e), lambda i: (0, 0))
    return pl.pallas_call(
        functools.partial(_proj_add_ln_kernel, eps=eps),
        grid=(n // tm,),
        out_shape=jax.ShapeDtypeStruct((n, e), jnp.bfloat16),
        in_specs=[row, row,
                  _invariant_spec((e, e), lambda i: (0, 0)),
                  vec, vec, vec],
        out_specs=row,
        compiler_params=pltpu.CompilerParams(
            dimension_semantics=("parallel",),
            vmem_limit_bytes=_vmem_limit_bytes()),
    )(a, x, w_t.astype(jnp.bfloat16), bias.reshape(1, -1),
      gamma.reshape(1, -1), beta.reshape(1, -1))


# ----------------------------------------------------------------------------
# Fused FFN (lin1 -> relu -> lin2, K-tiled over FF) + residual + LayerNorm
# (optionally also applies the encoder's final LayerNorm)
# ----------------------------------------------------------------------------
def _make_ffn_kernel(eps, fuse_final):
    def kernel(*args):
        if fuse_final:
            (x_ref, w1_ref, b1_ref, w2_ref, b2_ref,
             g_ref, bt_ref, g2_ref, bt2_ref, o_ref, acc_ref) = args
        else:
            (x_ref, w1_ref, b1_ref, w2_ref, b2_ref,
             g_ref, bt_ref, o_ref, acc_ref) = args
        fi = pl.program_id(1)

        @pl.when(fi == 0)
        def _():
            acc_ref[...] = jnp.zeros_like(acc_ref)

        hid = jnp.dot(x_ref[...], w1_ref[...],
                      preferred_element_type=jnp.float32) + b1_ref[...]
        hid = jnp.maximum(hid, 0.0)                     # ReLU stays in VMEM
        acc_ref[...] += jnp.dot(hid.astype(jnp.bfloat16), w2_ref[...],
                                preferred_element_type=jnp.float32)

        @pl.when(fi == pl.num_programs(1) - 1)
        def _():
            z = x_ref[...].astype(jnp.float32) + acc_ref[...] + b2_ref[...]
            y = _layernorm_f32(z, g_ref[...], bt_ref[...], eps)
            if fuse_final:
                y = _layernorm_f32(y, g2_ref[...], bt2_ref[...], eps)
            o_ref[...] = y.astype(o_ref.dtype)
    return kernel


def ffn_add_layernorm(x, w1_t, b1, w2_t, b2, gamma, beta,
                      final_ln=None, eps=_LN_EPS):
    n, e = x.shape
    ff = w1_t.shape[1]
    tm = _pick_tile(n, _row_tile_target())
    tff = _pick_tile(ff, 512, mult=128)
    nf = ff // tff

    row = pl.BlockSpec((tm, e), lambda i, f: (i, 0))
    w1s = pl.BlockSpec((e, tff), lambda i, f: (0, f))
    b1s = pl.BlockSpec((1, tff), lambda i, f: (0, f))
    w2s = pl.BlockSpec((tff, e), lambda i, f: (f, 0))
    vec = _invariant_spec((1, e), lambda i, f: (0, 0))
    out_spec = pl.BlockSpec((tm, e), lambda i, f: (i, 0))

    in_specs = [row, w1s, b1s, w2s, vec, vec, vec]
    args = [x, w1_t.astype(jnp.bfloat16), b1.reshape(1, -1),
            w2_t.astype(jnp.bfloat16), b2.reshape(1, -1),
            gamma.reshape(1, -1), beta.reshape(1, -1)]
    fuse_final = final_ln is not None
    if fuse_final:
        in_specs += [vec, vec]
        args += [final_ln[0].reshape(1, -1), final_ln[1].reshape(1, -1)]

    return pl.pallas_call(
        _make_ffn_kernel(eps, fuse_final),
        grid=(n // tm, nf),
        out_shape=jax.ShapeDtypeStruct((n, e), jnp.bfloat16),
        in_specs=in_specs,
        out_specs=out_spec,
        scratch_shapes=[pltpu.VMEM((tm, e), jnp.float32)],
        compiler_params=pltpu.CompilerParams(
            dimension_semantics=("parallel", "arbitrary"),
            vmem_limit_bytes=_vmem_limit_bytes()),
    )(*args)


# ----------------------------------------------------------------------------
# Plain LayerNorm (only used when the final norm cannot be fused)
# ----------------------------------------------------------------------------
def _ln_kernel(x_ref, g_ref, bt_ref, o_ref, *, eps):
    z = x_ref[...].astype(jnp.float32)
    o_ref[...] = _layernorm_f32(z, g_ref[...], bt_ref[...], eps).astype(o_ref.dtype)


def layernorm(x, gamma, beta, eps=_LN_EPS):
    n, e = x.shape
    tm = _pick_tile(n, _row_tile_target())
    row = pl.BlockSpec((tm, e), lambda i: (i, 0))
    vec = _invariant_spec((1, e), lambda i: (0, 0))
    return pl.pallas_call(
        functools.partial(_ln_kernel, eps=eps),
        grid=(n // tm,),
        out_shape=jax.ShapeDtypeStruct((n, e), jnp.bfloat16),
        in_specs=[row, vec, vec],
        out_specs=row,
        compiler_params=pltpu.CompilerParams(
            dimension_semantics=("parallel",),
            vmem_limit_bytes=_vmem_limit_bytes()),
    )(x, gamma.reshape(1, -1), beta.reshape(1, -1))


# ----------------------------------------------------------------------------
# Mask construction (never replicated over heads; None when no mask at all)
# ----------------------------------------------------------------------------
def build_additive_mask(src_mask, key_padding_mask, s):
    kp = sm = None
    if key_padding_mask is not None:
        if key_padding_mask.dtype == jnp.bool_:
            kp = jnp.where(key_padding_mask, _NEG_INF, 0.0).astype(jnp.float32)
        else:
            kp = key_padding_mask.astype(jnp.float32)
        kp = kp[:, None, :]                           # (B, 1, S)
    if src_mask is not None:
        if src_mask.dtype == jnp.bool_:
            sm = jnp.where(src_mask, _NEG_INF, 0.0).astype(jnp.float32)
        else:
            sm = src_mask.astype(jnp.float32)
        sm = sm[None, :, :]                           # (1, S, S)
    if kp is None and sm is None:
        return None
    if sm is None:
        return kp
    if kp is None:
        return sm
    return kp + sm                                    # (B, S, S)


# ----------------------------------------------------------------------------
# Encoder layer / encoder stack
# ----------------------------------------------------------------------------
def encoder_layer_forward(x, cond, p, add_mask, nhead, batch, seq,
                          final_ln=None):
    """Post-norm TransformerEncoderLayer (relu, no dropout). x: (B*S, E) bf16."""
    _, e = x.shape
    dh = e // nhead
    q, k, v, x_in = qkv_projection(x, cond, p["in_proj_w_t"], p["in_proj_b"],
                                   batch, seq, 1.0 / math.sqrt(dh))
    attn = attention(q, k, v, add_mask, nhead, batch, seq)
    x1 = proj_add_layernorm(attn, x_in, p["out_proj_w_t"], p["out_proj_b"],
                            p["ln1_g"], p["ln1_b"])
    x2 = ffn_add_layernorm(x1, p["lin1_w_t"], p["lin1_b"],
                           p["lin2_w_t"], p["lin2_b"],
                           p["ln2_g"], p["ln2_b"], final_ln=final_ln)
    return x2


def transformer_encoder_forward(src, layer_params, final_norm, nhead,
                                mask=None, src_key_padding_mask=None,
                                condition=None, return_additional_layer=None):
    s, b, e = src.shape
    in_dtype = src.dtype
    # single entry/exit layout change; everything per-layer stays (B*S, E) bf16
    x = jnp.transpose(src, (1, 0, 2)).reshape(b * s, e).astype(jnp.bfloat16)
    cond = None
    if condition is not None:
        cond = (jnp.transpose(condition, (1, 0, 2))
                .reshape(b * s, e).astype(jnp.bfloat16))
    add_mask = build_additive_mask(mask, src_key_padding_mask, s)

    num_layers = len(layer_params)
    out_extra = None
    for i, p in enumerate(layer_params):
        is_last = i == num_layers - 1
        fuse_final = (final_norm is not None and is_last
                      and return_additional_layer != i)
        x = encoder_layer_forward(
            x, cond, p, add_mask, nhead, b, s,
            final_ln=final_norm if fuse_final else None)
        if return_additional_layer is not None and i == return_additional_layer:
            out_extra = x
        if is_last and final_norm is not None and not fuse_final:
            x = layernorm(x, final_norm[0], final_norm[1])

    def to_sbe(y):
        return jnp.transpose(y.reshape(b, s, e), (1, 0, 2)).astype(in_dtype)

    out = to_sbe(x)
    if out_extra is not None:
        return out, to_sbe(out_extra)
    return out


# ----------------------------------------------------------------------------
# Deterministic parameter init (PyTorch-layout weights, stored transposed)
# ----------------------------------------------------------------------------
def init_layer_params(key, e, ff):
    ks = jax.random.split(key, 6)
    scale = 0.02
    return {
        "in_proj_w_t": (jax.random.normal(ks[0], (3 * e, e)) * scale).T
        .astype(jnp.float32),
        "in_proj_b": jnp.zeros((3 * e,), jnp.float32),
        "out_proj_w_t": (jax.random.normal(ks[1], (e, e)) * scale).T
        .astype(jnp.float32),
        "out_proj_b": jnp.zeros((e,), jnp.float32),
        "lin1_w_t": (jax.random.normal(ks[2], (ff, e)) * scale).T
        .astype(jnp.float32),
        "lin1_b": jnp.zeros((ff,), jnp.float32),
        "lin2_w_t": (jax.random.normal(ks[3], (e, ff)) * scale).T
        .astype(jnp.float32),
        "lin2_b": jnp.zeros((e,), jnp.float32),
        "ln1_g": jnp.ones((e,), jnp.float32),
        "ln1_b": jnp.zeros((e,), jnp.float32),
        "ln2_g": jnp.ones((e,), jnp.float32),
        "ln2_b": jnp.zeros((e,), jnp.float32),
    }


if __name__ == "__main__":
    S, B, E = 8, 2, 32          # seq, batch, d_model
    NHEAD = 4
    DIM_FF = 64
    NUM_LAYERS = 2

    key = jax.random.PRNGKey(0)
    k_src, k_cond, k_params = jax.random.split(key, 3)

    src = jax.random.normal(k_src, (S, B, E), jnp.float32)
    condition = jax.random.normal(k_cond, (S, B, E), jnp.float32)
    # last two keys of batch 1 are padded
    src_key_padding_mask = jnp.zeros((B, S), jnp.bool_).at[1, -2:].set(True)

    layer_keys = jax.random.split(k_params, NUM_LAYERS)
    layer_params = [init_layer_params(k, E, DIM_FF) for k in layer_keys]
    final_norm = (jnp.ones((E,), jnp.float32), jnp.zeros((E,), jnp.float32))

    out, out_extra = transformer_encoder_forward(
        src, layer_params, final_norm, NHEAD,
        mask=None,
        src_key_padding_mask=src_key_padding_mask,
        condition=condition,
        return_additional_layer=0,
    )
    jax.block_until_ready(out)
    jax.block_until_ready(out_extra)
    assert out.shape == (S, B, E) and out_extra.shape == (S, B, E)
    assert bool(jnp.all(jnp.isfinite(out)))
    assert bool(jnp.all(jnp.isfinite(out_extra)))
    print("KERNEL_OK")
</pallas_src>

<mosaic_0001>
module attributes {stable_mosaic.version = 11 : i64} {
  func.func @kernel(%arg0: i32, %arg1: i32, %arg2: memref<8x32xbf16, #tpu.memory_space<vmem>>, %arg3: memref<8x32xbf16, #tpu.memory_space<vmem>>, %arg4: memref<32x96xbf16, #tpu.memory_space<vmem>>, %arg5: memref<1x96xf32, #tpu.memory_space<vmem>>, %arg6: memref<8x32xbf16, #tpu.memory_space<vmem>>, %arg7: memref<8x32xbf16, #tpu.memory_space<vmem>>, %arg8: memref<8x32xbf16, #tpu.memory_space<vmem>>, %arg9: memref<8x32xbf16, #tpu.memory_space<vmem>>) attributes {dimension_semantics = [#tpu.dimension_semantics<parallel>, #tpu.dimension_semantics<parallel>], iteration_bounds = array<i64: 2, 1>, scalar_prefetch = 0 : i64, scratch_operands = 0 : i64, tpu.core_type = #tpu.core_type<tc>, window_params = [{transform_indices = @transform_0, window_bounds = array<i64: 8, 32>}, {transform_indices = @transform_1, window_bounds = array<i64: 8, 32>}, {pipeline_mode = #tpu.pipeline_mode<synchronous>, transform_indices = @transform_2, window_bounds = array<i64: 32, 96>}, {pipeline_mode = #tpu.pipeline_mode<synchronous>, transform_indices = @transform_3, window_bounds = array<i64: 1, 96>}, {transform_indices = @transform_4, window_bounds = array<i64: 8, 32>}, {transform_indices = @transform_5, window_bounds = array<i64: 8, 32>}, {transform_indices = @transform_6, window_bounds = array<i64: 8, 32>}, {transform_indices = @transform_7, window_bounds = array<i64: 8, 32>}]} {
    %c0 = arith.constant 0 : index
    %c0_0 = arith.constant 0 : index
    %0 = vector.load %arg2[%c0, %c0_0] : memref<8x32xbf16, #tpu.memory_space<vmem>>, vector<8x32xbf16>
    %1 = arith.extf %0 : vector<8x32xbf16> to vector<8x32xf32>
    %c0_1 = arith.constant 0 : index
    %c0_2 = arith.constant 0 : index
    %2 = vector.load %arg3[%c0_1, %c0_2] : memref<8x32xbf16, #tpu.memory_space<vmem>>, vector<8x32xbf16>
    %3 = arith.extf %2 : vector<8x32xbf16> to vector<8x32xf32>
    %4 = arith.addf %1, %3 : vector<8x32xf32>
    %5 = arith.truncf %4 : vector<8x32xf32> to vector<8x32xbf16>
    %c0_3 = arith.constant 0 : index
    %c0_4 = arith.constant 0 : index
    %6 = vector.load %arg9[%c0_3, %c0_4] : memref<8x32xbf16, #tpu.memory_space<vmem>>, vector<8x32xbf16>
    tpu.vector_store %arg9[%c0_3, %c0_4], %5 {strides = array<i32>} : memref<8x32xbf16, #tpu.memory_space<vmem>>, vector<8x32xbf16>,
    %7 = arith.truncf %4 : vector<8x32xf32> to vector<8x32xbf16>
    %c0_5 = arith.constant 0 : index
    %c0_6 = arith.constant 0 : index
    %8 = vector.load %arg4[%c0_5, %c0_6] : memref<32x96xbf16, #tpu.memory_space<vmem>>, vector<32x96xbf16>
    %cst = arith.constant dense<0.000000e+00> : vector<8x96xf32>
    %9 = tpu.matmul %7, %8, %cst {dimension_numbers = #tpu.dot_dimension_numbers<[1], [0], [0], [1], [0, 0, 1, 1], [], []>} : vector<8x32xbf16>, vector<32x96xbf16>, vector<8x96xf32> -> vector<8x96xf32>
    %c0_7 = arith.constant 0 : index
    %c0_8 = arith.constant 0 : index
    %10 = vector.load %arg5[%c0_7, %c0_8] : memref<1x96xf32, #tpu.memory_space<vmem>>, vector<1x96xf32>
    %11 = vector.broadcast %10 : vector<1x96xf32> to vector<8x96xf32>
    %12 = arith.addf %9, %11 : vector<8x96xf32>
    %13 = vector.extract_strided_slice %12 {offsets = [0, 0], sizes = [8, 32], strides = [1, 1]} : vector<8x96xf32> to vector<8x32xf32>
    %14 = arith.truncf %13 : vector<8x32xf32> to vector<8x32xbf16>
    %c0_9 = arith.constant 0 : index
    %c0_10 = arith.constant 0 : index
    %15 = vector.load %arg6[%c0_9, %c0_10] : memref<8x32xbf16, #tpu.memory_space<vmem>>, vector<8x32xbf16>
    tpu.vector_store %arg6[%c0_9, %c0_10], %14 {strides = array<i32>} : memref<8x32xbf16, #tpu.memory_space<vmem>>, vector<8x32xbf16>,
    %16 = vector.extract_strided_slice %12 {offsets = [0, 32], sizes = [8, 32], strides = [1, 1]} : vector<8x96xf32> to vector<8x32xf32>
    %17 = arith.truncf %16 : vector<8x32xf32> to vector<8x32xbf16>
    %c0_11 = arith.constant 0 : index
    %c0_12 = arith.constant 0 : index
    %18 = vector.load %arg7[%c0_11, %c0_12] : memref<8x32xbf16, #tpu.memory_space<vmem>>, vector<8x32xbf16>
    tpu.vector_store %arg7[%c0_11, %c0_12], %17 {strides = array<i32>} : memref<8x32xbf16, #tpu.memory_space<vmem>>, vector<8x32xbf16>,
    %19 = vector.extract_strided_slice %12 {offsets = [0, 64], sizes = [8, 32], strides = [1, 1]} : vector<8x96xf32> to vector<8x32xf32>
    %20 = arith.truncf %19 : vector<8x32xf32> to vector<8x32xbf16>
    %c0_13 = arith.constant 0 : index
    %c0_14 = arith.constant 0 : index
    %21 = vector.load %arg8[%c0_13, %c0_14] : memref<8x32xbf16, #tpu.memory_space<vmem>>, vector<8x32xbf16>
    tpu.vector_store %arg8[%c0_13, %c0_14], %20 {strides = array<i32>} : memref<8x32xbf16, #tpu.memory_space<vmem>>, vector<8x32xbf16>,
    return
  }
  func.func @transform_0(%arg0: i32, %arg1: i32) -> (i32, i32) {
    %c1_i32 = arith.constant 1 : i32
    %0 = arith.muli %arg0, %c1_i32 : i32
    %1 = arith.addi %0, %arg1 : i32
    %c0_i32 = arith.constant 0 : i32
    %c0_i32_0 = arith.constant 0 : i32
    return %1, %c0_i32 : i32, i32
  }
  func.func @transform_1(%arg0: i32, %arg1: i32) -> (i32, i32) {
    %c1_i32 = arith.constant 1 : i32
    %0 = arith.muli %arg0, %c1_i32 : i32
    %1 = arith.addi %0, %arg1 : i32
    %c0_i32 = arith.constant 0 : i32
    %c0_i32_0 = arith.constant 0 : i32
    return %1, %c0_i32 : i32, i32
  }
  func.func @transform_2(%arg0: i32, %arg1: i32) -> (i32, i32) {
    %c0_i32 = arith.constant 0 : i32
    %c0_i32_0 = arith.constant 0 : i32
    %c0_i32_1 = arith.constant 0 : i32
    return %c0_i32, %c0_i32_0 : i32, i32
  }
  func.func @transform_3(%arg0: i32, %arg1: i32) -> (i32, i32) {
    %c0_i32 = arith.constant 0 : i32
    %c0_i32_0 = arith.constant 0 : i32
    %c0_i32_1 = arith.constant 0 : i32
    return %c0_i32, %c0_i32_0 : i32, i32
  }
  func.func @transform_4(%arg0: i32, %arg1: i32) -> (i32, i32) {
    %c1_i32 = arith.constant 1 : i32
    %0 = arith.muli %arg0, %c1_i32 : i32
    %1 = arith.addi %0, %arg1 : i32
    %c0_i32 = arith.constant 0 : i32
    %c0_i32_0 = arith.constant 0 : i32
    return %1, %c0_i32 : i32, i32
  }
  func.func @transform_5(%arg0: i32, %arg1: i32) -> (i32, i32) {
    %c1_i32 = arith.constant 1 : i32
    %0 = arith.muli %arg0, %c1_i32 : i32
    %1 = arith.addi %0, %arg1 : i32
    %c0_i32 = arith.constant 0 : i32
    %c0_i32_0 = arith.constant 0 : i32
    return %1, %c0_i32 : i32, i32
  }
  func.func @transform_6(%arg0: i32, %arg1: i32) -> (i32, i32) {
    %c1_i32 = arith.constant 1 : i32
    %0 = arith.muli %arg0, %c1_i32 : i32
    %1 = arith.addi %0, %arg1 : i32
    %c0_i32 = arith.constant 0 : i32
    %c0_i32_0 = arith.constant 0 : i32
    return %1, %c0_i32 : i32, i32
  }
  func.func @transform_7(%arg0: i32, %arg1: i32) -> (i32, i32) {
    %c1_i32 = arith.constant 1 : i32
    %0 = arith.muli %arg0, %c1_i32 : i32
    %1 = arith.addi %0, %arg1 : i32
    %c0_i32 = arith.constant 0 : i32
    %c0_i32_0 = arith.constant 0 : i32
    return %1, %c0_i32 : i32, i32
  }
}

</mosaic_0001>

<bundles_post_ra>
// kernel: tpu_custom_call.1
= control target key start
LH: loop header
LB: loop body
LE: loop exit
PB: predicated region body
PF: predicated region fallthrough
CT: control target
= control target key end

     0   :  { %s1620_s0 = inlined_call_operand.hbm [shape: bf16[16,32], index: 0, kind: input, shape index: {}]   ;;  %s1621_s1 = inlined_call_operand.hbm [shape: bf16[16,32], index: 1, kind: input, shape index: {}]   ;;  %s1622_s2 = inlined_call_operand.hbm [shape: bf16[32,96], index: 2, kind: input, shape index: {}]   ;;  %s1623_s3 = inlined_call_operand.vmem [shape: f32[1,96], index: 3, kind: input, shape index: {}]   ;;  %s1624_s4 = inlined_call_operand.hbm [shape: bf16[16,32], index: 4, kind: output, shape index: {0}]   ;;  %s1625_s5 = inlined_call_operand.hbm [shape: bf16[16,32], index: 5, kind: output, shape index: {1}]   ;;  %s1626_s6 = inlined_call_operand.hbm [shape: bf16[16,32], index: 6, kind: output, shape index: {2}]   ;;  %s1627_s7 = inlined_call_operand.hbm [shape: bf16[16,32], index: 7, kind: output, shape index: {3}]  }
   0x1   :  { %1637 = sst [smem:[#allocation25_spill]] %s1622_s2 }
   0x2   :  { %13 = vsyncpa [#allocation3], 0 }
   0x3   :  { %15 = vsyncpa [#allocation3 + $0x1], 0 }
   0x4   :  { %16 = vsyncpa [#allocation6], 0 }
   0x5   :  { %18 = vsyncpa [#allocation6 + $0x1], 0 }
   0x6   :  { %19 = vsyncpa [#allocation4], 0 }
   0x7   :  { %21 = vsyncpa [#allocation4 + $0x1], 0 }
   0x8   :  { %22 = vsyncpa [#allocation10], 0 }
   0x9   :  { %24 = vsyncpa [#allocation10 + $0x1], 0 }
   0xa   :  { %25 = vsyncpa [#allocation13], 0 }
   0xb   :  { %27 = vsyncpa [#allocation13 + $0x1], 0  ;;  %s1245_s24 = smov 0   ;;  %s1247_s25 = smov 0  }
   0xc   :  { %s1249_s26 = smov 0   ;;  %s1251_s27 = smov 0  }
   0xd   :  { %s1253_s28 = smov 0   ;;  %s1255_s29 = smov 0  }
   0xe LB: > { %1638 = sst [smem:[#allocation20_spill]] %s1178_s26  ;;  %s1276_s30 = sadd.s32 4294967295, %s1190_s29   ;;  %s1190_s29 = sphi %s1255_s29, %s33_s29   ;;  %s1186_s28 = sphi %s1253_s28, %s1664_s28   ;;  %s1182_s27 = sphi %s1251_s27, %s1663_s27   ;;  %s1178_s26 = sphi %s1249_s26, %s1662_s26   ;;  %s1174_s25 = sphi %s1247_s25, %s1666_s25   ;;  %s1170_s24 = sphi %s1245_s24, %s1665_s24  }
   0xf   : > { %1639 = sst [smem:[#allocation21_spill]] %s1186_s28  ;;  %s1631_s8 = sadd.s32 4294967294, %s1190_s29  }
  0x10   : > { %p67_p0 = scmp.ne.s32.totalorder %s1174_s25, %s1170_s24  ;;  %p1628_p1 = scmp.eq.s32.totalorder %s1276_s30, 0 }
  0x11   : > { %p169_p3 = scmp.eq.s32.totalorder %s1631_s8, 1  ;;  %p777_p5 = scmp.ge.s32.totalorder %s1190_s29, 1 }
  0x12   : > { %p1287_p4 = por %p1628_p1, %p67_p0  ;;  %p260_p7 = scmp.lt.s32.totalorder %s1190_s29, 3 }
  0x13   : > { %p1292_p6 = por %p169_p3, %p67_p0  ;;  %s1192_s12 = smov [#allocation7]  }
  0x14   : > { %s1640_s9 = scalar_select %p1287_p4, 1, 0 }
  0x15   : > { %s1641_s10 = scalar_select %p1292_p6, 1, 0 }
  0x16   : > { %p1297_p8 = pnand %p777_p5, %p260_p7  ;;  %s272_s13 = sshll.u32 %s1192_s12, 4  ;;  %s273_s13 = int_to_ptr.vmem [resolvable:$true] %s272_s13 }
  0x17   : > { %1642 = sst [smem:[#allocation22_spill]] %s1641_s10  ;;  %s45_s15 = sadd.s32 1, %s1186_s28 }
  0x18   : > { %s1643_s11 = scalar_select %p1297_p8, 1, 0 }
  0x19   : > { %p835_p9 = pneg %p1297_p8  ;;  %s1645_s2 = sld [smem:[#allocation25_spill]] }
  0x1b   : > { %p1306_p11 = pnand %p835_p9, %p1628_p1 }
  0x1d   : > { %p922_p13 = pneg %p1306_p11 }
  0x1f   : > { %s920_s18 = scalar_lea.hbm %s1645_s2, 256 }
  0x20   : > { %p921_p12 = scmp.ne.s32.totalorder %s1645_s2, %s920_s18  ;;  %p927_p5 = scmp.lt.u32.totalorder %s920_s18, %s1645_s2 }
  0x22   : > { %p923_p0 = pnand %p922_p13, %p921_p12 }
  0x24   : > { %p924_p3 = pneg %p923_p0 }
  0x26   : > { %p929_p7 = pnand %p927_p5, %p924_p3 }
  0x28   : > { %932 = shalt.err (!%p929_p7)
}
  0x29   : > { %s933_s23 = scalar_lea.vmem %s273_s13, 256  ;;  %p941_p2 = scmp.lt.s32.totalorder %s273_s13, %s273_s13 }
  0x2a   : > { %p934_p9 = scmp.ne.s32.totalorder %s273_s13, %s933_s23  ;;  %p942_p6 = scmp.lt.s32.totalorder %s933_s23, %s933_s23 }
  0x2c   : > { %p936_p10 = pnand %p934_p9, %p922_p13  ;;  %p943_p4 = por %p942_p6, %p941_p2 }
  0x2e   : > { %p937_p1 = pneg %p936_p10 }
  0x30   : > { %p944_p8 = pnand %p943_p4, %p937_p1 }
  0x32   : > { %947 = shalt.err (!%p944_p8)
}
  0x33   : > { %s1193_s12 = smov 64   ;;  %s1194_s16 = smov 4  }
  0x34   : > { %838 = dma.hbm_to_vmem [thread:$0]  (!%p1306_p11), %s1645_s2, 256, %s273_s13, [#allocation6], %s1193_s12, %s1193_s12, %s1194_s16  }
  0x35   : > { %p47_p1 = scmp.ge.s32.totalorder %s45_s15, 2  ;;  %s54_s19 = sadd.s32 1, %s1178_s26 }
  0x36   : > { %p61_p2 = scmp.ne.s32.totalorder %s1178_s26, %s1174_s25  ;;  %p62_p4 = scmp.eq.s32.totalorder %s1190_s29, 0 }
  0x37   : > { %s1668_s15 = smov (%p47_p1, %s45_s15), 0  ;;  %p1648_p8 = scmp.eq.s32.totalorder %s1276_s30, 1 }
  0x38   : > { %1646 = sst [smem:[#allocation23_spill]] %s1668_s15  ;;  %p1333_p6 = por %p62_p4, %p61_p2 }
  0x39   : > { %p1339_p10 = por %p1648_p8, %p61_p2  ;;  %s51_s21 = ssub.s32 %s1186_s28, %s1668_s15 }
  0x3a   : > { %p860_p11 = scmp.lt.s32.totalorder %s1190_s29, 2  ;;  %p52_p12 = scmp.eq.s32.totalorder %s51_s21, 0 }
  0x3b   : > { %s1649_s14 = scalar_select %p1339_p10, 1, 0 }
  0x3c   : > { %s289_s13 = sand.u32 1, %s1178_s26   ;;  %s781_s12 = sshll.u32 %s1186_s28, 6 }
  0x3d   : > { %s1347_s22 = sshll.u32 %s289_s13, 2  ;;  %s1356_s18 = scalar_lea.hbm %s1620_s0, %s781_s12 }
  0x3e   : > { %s1350_s23 = scalar_select %p52_p12, %s1178_s26, %s54_s19  }
  0x3f   : > { %s293_s8 = scalar_lea.vmem [#allocation2], %s1347_s22  ;;  %p1363_p13 = pnand %p860_p11, %p1333_p6 }
  0x40   : > { %1650 = sst [smem:[#allocation24_spill]] %s1350_s23  ;;  %s301_s2 = sshll.u32 %s293_s8, 4  ;;  %s1359_s2 = int_to_ptr.vmem [resolvable:$true] %s301_s2 }
  0x41   : > { %s1370_s16 = scalar_lea.hbm %s1621_s1, %s781_s12  ;;  %s308_s17 = sand.u32 1, %s1190_s29  }
  0x42   : > { %s290_s28 = scalar_lea.sflag [#allocation3], %s289_s13  ;;  %s948_s23 = scalar_lea.hbm %s1356_s18, 64 }
  0x43   : > { %p949_p0 = scmp.ne.s32.totalorder %s1356_s18, %s948_s23  ;;  %p950_p3 = pneg %p1363_p13 }
  0x44   : > { %s953_s26 = scalar_lea.hbm %s1620_s0, 128  ;;  %p954_p9 = scmp.lt.u32.totalorder %s1356_s18, %s1620_s0 }
  0x45   : > { %p951_p5 = pnand %p950_p3, %p949_p0  ;;  %p955_p1 = scmp.lt.u32.totalorder %s953_s26, %s948_s23 }
  0x46   : > { %p957_p4 = scmp.lt.u32.totalorder %s948_s23, %s1356_s18 }
  0x47   : > { %p952_p7 = pneg %p951_p5  ;;  %p956_p2 = por %p955_p1, %p954_p9 }
  0x49   : > { %p958_p6 = por %p957_p4, %p956_p2 }
  0x4b   : > { %p959_p8 = pnand %p958_p6, %p952_p7 }
  0x4d   : > { %962 = shalt.err (!%p959_p8)
}
  0x4e   : > { %s963_s13 = scalar_lea.vmem %s1359_s2, 64  ;;  %s1195_s12 = smov [#allocation2]  }
  0x4f   : > { %p964_p11 = scmp.ne.s32.totalorder %s1359_s2, %s963_s13  ;;  %s968_s19 = sshll.u32 %s1195_s12, 4  ;;  %s969_s19 = int_to_ptr.vmem [resolvable:$false] %s968_s19 }
  0x50   : > { %s970_s10 = scalar_lea.vmem %s969_s19, 128  ;;  %p971_p5 = scmp.lt.s32.totalorder %s1359_s2, %s969_s19 }
  0x51   : > { %p966_p12 = pnand %p964_p11, %p950_p3  ;;  %p972_p9 = scmp.lt.s32.totalorder %s970_s10, %s963_s13 }
  0x53   : > { %p967_p0 = pneg %p966_p12  ;;  %p973_p1 = por %p972_p9, %p971_p5 }
  0x55   : > { %p974_p2 = pnand %p973_p1, %p967_p0 }
  0x57   : > { %977 = shalt.err (!%p974_p2)
}
  0x58   : > { %842 = dma.hbm_to_vmem [thread:$0]  (!%p1363_p13), %s1356_s18, 64, %s1359_s2, %s290_s28  }
  0x59   : > { %s312_s26 = scalar_lea.vmem [#allocation5], %s1347_s22  ;;  %s309_s8 = scalar_lea.sflag [#allocation6], %s308_s17 }
  0x5a   : > { %s320_s23 = sshll.u32 %s312_s26, 4  ;;  %s978_s20 = scalar_lea.hbm %s1370_s16, 64  ;;  %s321_s23 = int_to_ptr.vmem [resolvable:$true] %s320_s23 }
  0x5b   : > { %p979_p7 = scmp.ne.s32.totalorder %s1370_s16, %s978_s20  ;;  %s983_s12 = scalar_lea.hbm %s1621_s1, 128 }
  0x5c   : > { %p984_p8 = scmp.lt.u32.totalorder %s1370_s16, %s1621_s1  ;;  %p985_p11 = scmp.lt.u32.totalorder %s983_s12, %s978_s20 }
  0x5d   : > { %p981_p4 = pnand %p979_p7, %p950_p3  ;;  %p987_p0 = scmp.lt.u32.totalorder %s978_s20, %s1370_s16 }
  0x5e   : > { %p986_p12 = por %p985_p11, %p984_p8 }
  0x5f   : > { %p982_p6 = pneg %p981_p4 }
  0x60   : > { %p988_p5 = por %p987_p0, %p986_p12 }
  0x62   : > { %p989_p9 = pnand %p988_p5, %p982_p6 }
  0x64   : > { %992 = shalt.err (!%p989_p9)
}
  0x65   : > { %s993_s2 = scalar_lea.vmem %s321_s23, 64  ;;  %s1196_s28 = smov [#allocation5]  }
  0x66   : > { %p994_p1 = scmp.ne.s32.totalorder %s321_s23, %s993_s2  ;;  %s998_s22 = sshll.u32 %s1196_s28, 4  ;;  %s999_s22 = int_to_ptr.vmem [resolvable:$false] %s998_s22 }
  0x67   : > { %s1000_s18 = scalar_lea.vmem %s999_s22, 128  ;;  %p1001_p4 = scmp.lt.s32.totalorder %s321_s23, %s999_s22 }
  0x68   : > { %p996_p2 = pnand %p994_p1, %p950_p3  ;;  %p1002_p10 = scmp.lt.s32.totalorder %s1000_s18, %s993_s2 }
  0x6a   : > { %p997_p7 = pneg %p996_p2  ;;  %p1003_p8 = por %p1002_p10, %p1001_p4 }
  0x6c   : > { %p1004_p11 = pnand %p1003_p8, %p997_p7 }
  0x6e   : > { %1007 = shalt.err (!%p1004_p11)
}
  0x6f   : > { %845 = dma.hbm_to_vmem [thread:$0]  (!%p1363_p13), %s1370_s16, 64, %s321_s23, %s309_s8  }
  0x70   : > { %p1652_p6 = scmp.ne.s32.totalorder %s1643_s11, 0 }
  0x71   : > { %s1423_s17 = sand.u32 (!%p1652_p6), 1, %s1174_s25   ;;  %p1653_p10 = scmp.ne.s32.totalorder (!%p1652_p6), %s1640_s9, 0 }
  0x72   : > { %329 = sbr.rel (%p1652_p6) target bundleno = 518 (0x206), region = 36  ;;  %s1426_s26 = sshll.u32 (!%p1652_p6), %s1423_s17, 2 }
  0x73   : > { %s332_s20 = scalar_lea.sflag (!%p1652_p6), [#allocation3], %s1423_s17  ;;  %s335_s15 = scalar_lea.vmem (!%p1652_p6), [#allocation2], %s1426_s26 }
  0x79   : > { %1145 = dma.done.wait (%p1653_p10), %s332_s20, 64  }
  0x7a   : > { %1147 = vsyncadd (%p1653_p10), %s332_s20, 4294967232  ;;  %s340_s11 = sand.u32 1, %s1276_s30   ;;  %s344_s16 = scalar_lea.vmem [#allocation5], %s1426_s26 }
  0x7b   : > { %s341_s21 = scalar_lea.sflag [#allocation6], %s340_s11 }
  0x7c   : > { %1149 = dma.done.wait (%p1653_p10), %s341_s21, 64  }
  0x7d   : > { %1151 = vsyncadd (%p1653_p10), %s341_s21, 4294967232  ;;  %p1654_p13 = scmp.eq.s32.totalorder %s1276_s30, 0 }
  0x7f   : > { %1153 = dma.done.wait (%p1654_p13), [#allocation6], 256   ;;  %p1655_p3 = pmov %p1654_p13 }
  0x80   : > { %v1197_v0 = vmov 0.0   ;;  %vm1198_vm0 = vmmov 0   ;;  %v918_v1 = vld [vmem:[#allocation7] sm:$0xff]   ;;  %v919_v2 = vld [vmem:[#allocation7 + $0x8] sm:$0xff]   ;;  %v406_v3 = vld [vmem:[%s335_s15] sm:$0xf] }
  0x81   : > { %1155 = vsyncadd (%p1655_p3), [#allocation6], 4294967040  ;;  %811 = vmatprep.subr.bf16.mxu0 %v1197_v0  ;;  %815 = vmatprep.mubr.msk.bf16.mxu0 %vm1198_vm0, %v1197_v0  ;;  %v408_v4 = vld [vmem:[%s344_s16] sm:$0xf]  ;;  %v407_v5 = vunpack.c.l.bf16 %v406_v3  ;;  %vm437_vm1 = vcmask 261120   ;;  %s1447_s9 = sshll.u32 %s1182_s27, 6 }
  0x82   : > { %812 = vmatpush3.bf16.msra.mxu0 %v918_v1  ;;  %v409_v6 = vunpack.c.l.bf16 %v408_v4  ;;  %v792_v9 = vld [vmem:[%s1623_s3] ss:$0 sm:$0xff]  ;;  %vm412_vm2 = vcmask 257024   ;;  %s377_s13 = scalar_lea.vmem [#allocation8], %s1426_s26  ;;  %s398_s19 = scalar_lea.vmem [#allocation12], %s1426_s26 }
  0x83   : > { %813 = vmatprep.subr.bf16.mxu0 %v1197_v0  ;;  %s524_s12 = sshll.u32 %s377_s13, 4  ;;  %s1461_s27 = scalar_lea.hbm %s1627_s7, %s1447_s9  ;;  %s1469_s12 = int_to_ptr.vmem [resolvable:$true] %s524_s12 }
  0x84   : > { %v410_v7 = vadd.f32 %v409_v6, %v407_v5  ;;  %s1467_s18 = scalar_lea.hbm %s1624_s4, %s1447_s9  ;;  %s566_s20 = sshll.u32 %s398_s19, 4  ;;  %s1471_s20 = int_to_ptr.vmem [resolvable:$true] %s566_s20 }
  0x85   : > { %s510_s15 = scalar_lea.sflag [#allocation13], %s1423_s17  ;;  %s1008_s21 = scalar_lea.vmem %s1471_s20, 64 }
  0x86   : > { %814 = vmatpush3.bf16.msra.mxu0 %v919_v2  ;;  %v411_v8 = vpack.c.bf16 %v410_v7, %v410_v7  ;;  %p1009_p12 = scmp.ne.s32.totalorder %s1471_s20, %s1008_s21  ;;  %p1656_p0 = scmp.ne.s32.totalorder %s1649_s14, 0 }
  0x87   : > { %s1199_s16 = smov [#allocation12]  }
  0x88   : > { %413 = vst.msk [vmem:[%s398_s19] sm:$0xf] %vm412_vm2, %v411_v8  ;;  %p1010_p5 = pnand %p1009_p12, %p1656_p0  ;;  %s1012_s23 = sshll.u32 %s1199_s16, 4  ;;  %s1013_s23 = int_to_ptr.vmem [resolvable:$false] %s1012_s23 }
  0x89   : > { %816 = vmatmul.mubr.msk.bf16.vlgmr.msra.gmra.mrb[0].mxu0 %vm437_vm1, %v411_v8  ;;  %s1014_s8 = scalar_lea.vmem %s1013_s23, 128  ;;  %p1015_p1 = scmp.lt.s32.totalorder %s1471_s20, %s1013_s23 }
  0x8a   : > { %p1011_p9 = pneg %p1010_p5  ;;  %p1016_p2 = scmp.lt.s32.totalorder %s1014_s8, %s1008_s21 }
  0x8c   : > { %p1017_p7 = por %p1016_p2, %p1015_p1 }
  0x8e   : > { %p1018_p4 = pnand %p1017_p7, %p1011_p9 }
 0x15c   : > { %v475_v10 = vpop.f32.mrb[0].mxu0 }
 0x15d   : > { %v476_v11 = vadd.f32 %v792_v9, %v475_v10  ;;  %v817_v12 = vpop.f32.mrb[1].mxu0 }
 0x15e   : > { %v478_v13 = vpop.f32.mrb[2].mxu0 }
 0x15f   : > { %v481_v14 = vpack.c.bf16 %v476_v11, %v476_v11  ;;  %v818_v15 = vpop.f32.mrb[3].mxu0 }
 0x160   : > { %1021 = shalt.err (!%p1018_p4)
}
 0x161   : > { %s1022_s19 = scalar_lea.hbm %s1461_s27, 64  ;;  %s1026_s28 = scalar_lea.hbm %s1627_s7, 128 }
 0x162   : > { %p1023_p8 = scmp.ne.s32.totalorder %s1461_s27, %s1022_s19  ;;  %p1027_p10 = scmp.lt.u32.totalorder %s1461_s27, %s1627_s7 }
 0x163   : > { %p1028_p13 = scmp.lt.u32.totalorder %s1026_s28, %s1022_s19  ;;  %p1030_p12 = scmp.lt.u32.totalorder %s1022_s19, %s1461_s27 }
 0x164   : > { %p1024_p11 = pnand %p1023_p8, %p1656_p0 }
 0x165   : > { %p1029_p3 = por %p1028_p13, %p1027_p10 }
 0x166   : > { %p1025_p6 = pneg %p1024_p11 }
 0x167   : > { %p1031_p5 = por %p1030_p12, %p1029_p3 }
 0x169   : > { %p1032_p9 = pnand %p1031_p5, %p1025_p6 }
 0x16b   : > { %1035 = shalt.err (!%p1032_p9)
}
 0x16c   : > { %830 = dma.vmem_to_hbm [thread:$0]  (%p1656_p0), %s1471_s20, 64, %s1461_s27, %s510_s15   ;;  %482 = vst.msk [vmem:[%s377_s13] sm:$0xf] %vm412_vm2, %v481_v14 }
 0x16d   : > { %s1200_s21 = smov 96   ;;  %s495_s23 = scalar_lea.sflag [#allocation4], %s1423_s17 }
 0x16e   : > { %486 = vrot.lane.b32.xlu0 %v481_v14, %s1200_s21  ;;  %s1036_s8 = scalar_lea.vmem %s1469_s12, 64  ;;  %s1201_s19 = smov [#allocation8]  }
 0x16f   : > { %p1037_p1 = scmp.ne.s32.totalorder %s1469_s12, %s1036_s8  ;;  %s1040_s10 = sshll.u32 %s1201_s19, 4  ;;  %s1041_s10 = int_to_ptr.vmem [resolvable:$false] %s1040_s10 }
 0x170   : > { %s1042_s2 = scalar_lea.vmem %s1041_s10, 128  ;;  %p1043_p4 = scmp.lt.s32.totalorder %s1469_s12, %s1041_s10 }
 0x171   : > { %p1038_p2 = pnand %p1037_p1, %p1656_p0  ;;  %p1044_p8 = scmp.lt.s32.totalorder %s1042_s2, %s1036_s8 }
 0x173   : > { %p1039_p7 = pneg %p1038_p2  ;;  %p1045_p11 = por %p1044_p8, %p1043_p4 }
 0x175   : > { %p1046_p6 = pnand %p1045_p11, %p1039_p7 }
 0x177   : > { %1049 = shalt.err (!%p1046_p6)
}
 0x178   : > { %s1050_s17 = scalar_lea.hbm %s1467_s18, 64  ;;  %s1054_s20 = scalar_lea.hbm %s1624_s4, 128 }
 0x179   : > { %p1051_p10 = scmp.ne.s32.totalorder %s1467_s18, %s1050_s17  ;;  %p1055_p12 = scmp.lt.u32.totalorder %s1467_s18, %s1624_s4 }
 0x17a   : > { %p1056_p5 = scmp.lt.u32.totalorder %s1054_s20, %s1050_s17  ;;  %p1058_p1 = scmp.lt.u32.totalorder %s1050_s17, %s1467_s18 }
 0x17b   : > { %p1052_p13 = pnand %p1051_p10, %p1656_p0 }
 0x17c   : > { %p1057_p9 = por %p1056_p5, %p1055_p12 }
 0x17d   : > { %p1053_p3 = pneg %p1052_p13 }
 0x17e   : > { %p1059_p2 = por %p1058_p1, %p1057_p9 }
 0x180   : > { %p1060_p7 = pnand %p1059_p2, %p1053_p3 }
 0x182   : > { %1063 = shalt.err (!%p1060_p7)
}
 0x183   : > { %827 = dma.vmem_to_hbm [thread:$0]  (%p1656_p0), %s1469_s12, 64, %s1467_s18, %s495_s23  }
 0x184   : > { %s1202_s22 = smov 64   ;;  %s384_s16 = scalar_lea.vmem [#allocation9], %s1426_s26 }
 0x185   : > { %490 = vrot.lane.b32.xlu0 %v481_v14, %s1202_s22  ;;  %s538_s21 = sshll.u32 %s384_s16, 4  ;;  %s1525_s10 = scalar_lea.hbm %s1625_s5, %s1447_s9  ;;  %s1527_s21 = int_to_ptr.vmem [resolvable:$true] %s538_s21 }
 0x186   : > { %s391_s2 = scalar_lea.vmem [#allocation11], %s1426_s26  ;;  %s1537_s12 = scalar_lea.sflag [#allocation10], %s340_s11 }
 0x187   : > { %s1532_s17 = sshll.u32 %s391_s2, 4  ;;  %s1064_s18 = scalar_lea.vmem %s1527_s21, 64  ;;  %s1568_s17 = int_to_ptr.vmem [resolvable:$true] %s1532_s17 }
 0x188   : > { %p1065_p4 = scmp.ne.s32.totalorder %s1527_s21, %s1064_s18  ;;  %s1203_s23 = smov [#allocation9]  }
 0x189   : > { %s1068_s13 = sshll.u32 %s1203_s23, 4  ;;  %s1069_s13 = int_to_ptr.vmem [resolvable:$false] %s1068_s13 }
 0x18a   : > { %p1066_p8 = pnand %p1065_p4, %p1656_p0  ;;  %s1070_s27 = scalar_lea.vmem %s1069_s13, 128 }
 0x18b   : > { %p1071_p6 = scmp.lt.s32.totalorder %s1527_s21, %s1069_s13  ;;  %p1072_p10 = scmp.lt.s32.totalorder %s1070_s27, %s1064_s18 }
 0x18c   : > { %p1067_p11 = pneg %p1066_p8 }
 0x18d   : > { %p1073_p13 = por %p1072_p10, %p1071_p6 }
 0x18f   : > { %p1074_p3 = pnand %p1073_p13, %p1067_p11 }
 0x1e0   : > { %v487_v16 = vpop.permute.xlu0 %486 }
 0x1e1   : > { %489 = vst.msk [vmem:[%s384_s16] sm:$0xf] %vm412_vm2, %v487_v16 }
 0x1e2   : > { %1077 = shalt.err (!%p1074_p3)
}
 0x1e3   : > { %s1078_s30 = scalar_lea.hbm %s1525_s10, 64  ;;  %s1082_s15 = scalar_lea.hbm %s1625_s5, 128 }
 0x1e4   : > { %p1079_p12 = scmp.ne.s32.totalorder %s1525_s10, %s1078_s30  ;;  %p1083_p1 = scmp.lt.u32.totalorder %s1525_s10, %s1625_s5 }
 0x1e5   : > { %p1084_p2 = scmp.lt.u32.totalorder %s1082_s15, %s1078_s30  ;;  %p1086_p4 = scmp.lt.u32.totalorder %s1078_s30, %s1525_s10 }
 0x1e6   : > { %p1080_p5 = pnand %p1079_p12, %p1656_p0 }
 0x1e7   : > { %p1085_p7 = por %p1084_p2, %p1083_p1 }
 0x1e8   : > { %p1081_p9 = pneg %p1080_p5 }
 0x1e9   : > { %p1087_p8 = por %p1086_p4, %p1085_p7 }
 0x1eb   : > { %p1088_p11 = pnand %p1087_p8, %p1081_p9 }
 0x1ed   : > { %1091 = shalt.err (!%p1088_p11)
}
 0x1ee   : > { %828 = dma.vmem_to_hbm [thread:$0]  (%p1656_p0), %s1527_s21, 64, %s1525_s10, %s1537_s12  }
 0x1ef   : > { %s1565_s19 = scalar_lea.hbm %s1626_s6, %s1447_s9  ;;  %s1092_s18 = scalar_lea.vmem %s1568_s17, 64 }
 0x1f0   : > { %p1093_p6 = scmp.ne.s32.totalorder %s1568_s17, %s1092_s18  ;;  %s1204_s21 = smov [#allocation11]  }
 0x1f1   : > { %s1096_s10 = sshll.u32 %s1204_s21, 4  ;;  %s1097_s10 = int_to_ptr.vmem [resolvable:$false] %s1096_s10 }
 0x1f2   : > { %p1094_p10 = pnand %p1093_p6, %p1656_p0  ;;  %s1098_s23 = scalar_lea.vmem %s1097_s10, 128 }
 0x1f3   : > { %p1099_p3 = scmp.lt.s32.totalorder %s1568_s17, %s1097_s10  ;;  %p1100_p12 = scmp.lt.s32.totalorder %s1098_s23, %s1092_s18 }
 0x1f4   : > { %p1095_p13 = pneg %p1094_p10 }
 0x1f5   : > { %p1101_p5 = por %p1100_p12, %p1099_p3 }
 0x1f7   : > { %v491_v17 = vpop.permute.xlu0 %490  ;;  %p1102_p9 = pnand %p1101_p5, %p1095_p13 }
 0x1f8   : > { %493 = vst.msk [vmem:[%s391_s2] sm:$0xf] %vm412_vm2, %v491_v17 }
 0x1f9   : > { %1105 = shalt.err (!%p1102_p9)
}
 0x1fa   : > { %s1106_s26 = scalar_lea.hbm %s1565_s19, 64  ;;  %s1110_s13 = scalar_lea.hbm %s1626_s6, 128 }
 0x1fb   : > { %p1107_p1 = scmp.ne.s32.totalorder %s1565_s19, %s1106_s26  ;;  %p1111_p4 = scmp.lt.u32.totalorder %s1565_s19, %s1626_s6 }
 0x1fc   : > { %p1112_p8 = scmp.lt.u32.totalorder %s1110_s13, %s1106_s26  ;;  %p1114_p6 = scmp.lt.u32.totalorder %s1106_s26, %s1565_s19 }
 0x1fd   : > { %p1108_p2 = pnand %p1107_p1, %p1656_p0 }
 0x1fe   : > { %p1113_p11 = por %p1112_p8, %p1111_p4 }
 0x1ff   : > { %p1109_p7 = pneg %p1108_p2 }
 0x200   : > { %p1115_p10 = por %p1114_p6, %p1113_p11 }
 0x202   : > { %p1116_p13 = pnand %p1115_p10, %p1109_p7 }
 0x204   : > { %1119 = shalt.err (!%p1116_p13)
}
 0x205   : > { %829 = dma.vmem_to_hbm [thread:$0]  (%p1656_p0), %s1568_s17, 64, %s1565_s19, %s1537_s12  }
 0x206 PF: > { %s1657_s11 = sld [smem:[#allocation22_spill]]  ;;  %s578_s20 = sand.u32 1, %s1170_s24  }
 0x207   : > { %p1659_p12 = scmp.ge.s32.totalorder %s1190_s29, 2  ;;  %s579_s15 = scalar_lea.sflag [#allocation4], %s578_s20 }
 0x20c   : > { %p1658_p3 = scmp.ne.s32.totalorder %s1657_s11, 0 }
 0x20e   : > { %p847_p5 = pnand %p1659_p12, %p1658_p3 }
 0x210   : > { %1157 = dma.done.wait (!%p847_p5), %s579_s15, 64  }
 0x211   : > { %1159 = vsyncadd (!%p847_p5), %s579_s15, 4294967232  ;;  %s1660_s28 = sadd.s32 4294967294, %s1190_s29  }
 0x212   : > { %s587_s22 = sand.u32 1, %s1660_s28  }
 0x213   : > { %s588_s16 = scalar_lea.sflag [#allocation10], %s587_s22 }
 0x214   : > { %1161 = dma.done.wait (!%p847_p5), %s588_s16, 128  }
 0x215   : > { %1163 = vsyncadd (!%p847_p5), %s588_s16, 4294967168  ;;  %s606_s14 = scalar_lea.sflag [#allocation13], %s578_s20 }
 0x216   : > { %1165 = dma.done.wait (!%p847_p5), %s606_s14, 64  }
 0x217   : > { %1167 = vsyncadd (!%p847_p5), %s606_s14, 4294967232  ;;  %s33_s29 = sadd.s32 1, %s1190_s29   ;;  %s1661_s17 = sld [smem:[#allocation20_spill]] }
 0x218   : > { %p30_p0 = scmp.ge.s32.totalorder %s33_s29, 4   ;;  %s1662_s26 = sld [smem:[#allocation24_spill]] }
 0x219   : > { %s1663_s27 = sld [smem:[#allocation21_spill]]  ;;  %s1664_s28 = sld [smem:[#allocation23_spill]] }
 0x21a   : > { %s1665_s24 = smov %s1174_s25  ;;  %32 = sbr.rel (!%p30_p0) target bundleno = 14 (0xe), region = 147 }
 0x21d   : > { %s1666_s25 = smov %s1661_s17 }
 0x221   :  { %611 = vsyncpa [#allocation3], 1 }
 0x222   :  { %613 = vsyncpa [#allocation3 + $0x1], 1 }
 0x223   :  { %614 = vsyncpa [#allocation6], 1 }
 0x224   :  { %616 = vsyncpa [#allocation6 + $0x1], 1 }
 0x225   :  { %617 = vsyncpa [#allocation4], 1 }
 0x226   :  { %619 = vsyncpa [#allocation4 + $0x1], 1 }
 0x227   :  { %620 = vsyncpa [#allocation10], 1 }
 0x228   :  { %622 = vsyncpa [#allocation10 + $0x1], 1 }
 0x229   :  { %623 = vsyncpa [#allocation13], 1 }
 0x22a   :  { %625 = vsyncpa [#allocation13 + $0x1], 1 }

</bundles_post_ra>
